<compile_context>
chip_gen: v6e
topology: v6e:2x2x1
jax: 0.10.0
libtpu: 0.0.40
codegen_flags: <defaults>
</compile_context>

<pallas_src>
import math
import functools

import jax
import jax.numpy as jnp
from jax import lax
from jax.experimental import pallas as pl
from jax.experimental.pallas import tpu as pltpu


_MASK_VALUE = -1e30  # large negative; exp(mask - m) underflows to exactly 0


def _pick_tile(dim, target, align):
    """Largest tile <= target that divides `dim` and is a multiple of `align`;
    falls back to the full dim (always a legal BlockSpec block)."""
    if dim <= target:
        return dim
    t = (target // align) * align
    while t >= align:
        if dim % t == 0:
            return t
        t -= align
    return dim


@functools.lru_cache(maxsize=1)
def _vmem_limit_bytes():
    """~75% of physical VMEM, capped at 100 MiB; 48 MiB fallback (safe on v7x)."""
    try:
        cap = int(pltpu.get_tpu_info().vmem_capacity_bytes)
        return int(min(cap * 3 // 4, 100 * 1024 * 1024))
    except Exception:
        return 48 * 1024 * 1024


# ----------------------------------------------------------------------------
# Tiled linear kernel: y = x @ W + b with f32 VMEM accumulator over K tiles.
# ----------------------------------------------------------------------------
def _linear_kernel(x_ref, w_ref, b_ref, o_ref, acc_ref):
    k = pl.program_id(2)

    @pl.when(k == 0)
    def _init():
        acc_ref[...] = jnp.zeros_like(acc_ref)

    acc_ref[...] += jnp.dot(x_ref[...], w_ref[...],
                            preferred_element_type=jnp.float32)

    @pl.when(k == pl.num_programs(2) - 1)
    def _finish():
        o_ref[...] = (acc_ref[...] + b_ref[...].astype(jnp.float32)
                      ).astype(o_ref.dtype)


def linear(x, w, b):
    """x: (M, K), w: (K, N), b: (1, N) -> (M, N)."""
    m, k = x.shape
    _, n = w.shape
    tm = _pick_tile(m, 512, 8)
    tn = _pick_tile(n, 512, 128)
    tk = _pick_tile(k, 1024, 128)

    itemsize = x.dtype.itemsize
    cost = pl.CostEstimate(
        flops=2 * m * n * k,
        transcendentals=0,
        bytes_accessed=itemsize * (m * k + k * n + m * n + n),
    )
    return pl.pallas_call(
        _linear_kernel,
        out_shape=jax.ShapeDtypeStruct((m, n), x.dtype),
        grid_spec=pltpu.PrefetchScalarGridSpec(
            num_scalar_prefetch=0,
            grid=(m // tm, n // tn, k // tk),
            in_specs=[
                pl.BlockSpec((tm, tk), lambda i, j, kk: (i, kk)),
                pl.BlockSpec((tk, tn), lambda i, j, kk: (kk, j)),
                pl.BlockSpec((1, tn), lambda i, j, kk: (0, j)),
            ],
            out_specs=pl.BlockSpec((tm, tn), lambda i, j, kk: (i, j)),
            scratch_shapes=[pltpu.VMEM((tm, tn), jnp.float32)],
        ),
        compiler_params=pltpu.CompilerParams(
            dimension_semantics=("parallel", "parallel", "arbitrary"),
            vmem_limit_bytes=_vmem_limit_bytes(),
        ),
        cost_estimate=cost,
    )(x, w, b)


# ----------------------------------------------------------------------------
# Fused K/V projection: k = x @ Wk + bk, v = x @ Wv + bv, two outputs.
# The x tile is DMA'd once and reused for both matmuls; no wrapper slicing.
# ----------------------------------------------------------------------------
def _linear_kv_kernel(x_ref, wk_ref, bk_ref, wv_ref, bv_ref,
                      ko_ref, vo_ref, acck_ref, accv_ref):
    kk = pl.program_id(2)

    @pl.when(kk == 0)
    def _init():
        acck_ref[...] = jnp.zeros_like(acck_ref)
        accv_ref[...] = jnp.zeros_like(accv_ref)

    x = x_ref[...]
    acck_ref[...] += jnp.dot(x, wk_ref[...], preferred_element_type=jnp.float32)
    accv_ref[...] += jnp.dot(x, wv_ref[...], preferred_element_type=jnp.float32)

    @pl.when(kk == pl.num_programs(2) - 1)
    def _finish():
        ko_ref[...] = (acck_ref[...] + bk_ref[...].astype(jnp.float32)
                       ).astype(ko_ref.dtype)
        vo_ref[...] = (accv_ref[...] + bv_ref[...].astype(jnp.float32)
                       ).astype(vo_ref.dtype)


def linear_kv(x, wk, bk, wv, bv):
    """x: (M, K); wk/wv: (K, N); bk/bv: (1, N) -> ((M, N), (M, N))."""
    m, k = x.shape
    _, n = wk.shape
    tm = _pick_tile(m, 512, 8)
    tn = _pick_tile(n, 512, 128)
    tk = _pick_tile(k, 1024, 128)

    itemsize = x.dtype.itemsize
    cost = pl.CostEstimate(
        flops=4 * m * n * k,
        transcendentals=0,
        bytes_accessed=itemsize * (m * k + 2 * k * n + 2 * m * n + 2 * n),
    )
    out_spec = pl.BlockSpec((tm, tn), lambda i, j, kk: (i, j))
    return pl.pallas_call(
        _linear_kv_kernel,
        out_shape=(jax.ShapeDtypeStruct((m, n), x.dtype),
                   jax.ShapeDtypeStruct((m, n), x.dtype)),
        grid_spec=pltpu.PrefetchScalarGridSpec(
            num_scalar_prefetch=0,
            grid=(m // tm, n // tn, k // tk),
            in_specs=[
                pl.BlockSpec((tm, tk), lambda i, j, kk: (i, kk)),
                pl.BlockSpec((tk, tn), lambda i, j, kk: (kk, j)),
                pl.BlockSpec((1, tn), lambda i, j, kk: (0, j)),
                pl.BlockSpec((tk, tn), lambda i, j, kk: (kk, j)),
                pl.BlockSpec((1, tn), lambda i, j, kk: (0, j)),
            ],
            out_specs=(out_spec, out_spec),
            scratch_shapes=[pltpu.VMEM((tm, tn), jnp.float32),
                            pltpu.VMEM((tm, tn), jnp.float32)],
        ),
        compiler_params=pltpu.CompilerParams(
            dimension_semantics=("parallel", "parallel", "arbitrary"),
            vmem_limit_bytes=_vmem_limit_bytes(),
        ),
        cost_estimate=cost,
    )(x, wk, bk, wv, bv)


# ----------------------------------------------------------------------------
# Flash-attention kernel: one (batch, kv-group, q-tile, kv-tile) step.
# q block: (1, 1, n_rep, tq, d) viewed as (n_rep*tq, d); k/v blocks: (1,1,tkv,d).
# Scratch: running max m, denom l (n_rep*tq, 1), accumulator (n_rep*tq, d).
# ----------------------------------------------------------------------------
def _flash_attn_kernel(q_ref, k_ref, v_ref, o_ref, m_ref, l_ref, acc_ref,
                       *, scale, n_rep, tq, tkv, head_dim, is_causal, flat_out):
    qt = pl.program_id(2)
    kt = pl.program_id(3)
    n_kv_tiles = pl.num_programs(3)
    rows = n_rep * tq

    @pl.when(kt == 0)
    def _init():
        m_ref[...] = jnp.full_like(m_ref, -jnp.inf)
        l_ref[...] = jnp.zeros_like(l_ref)
        acc_ref[...] = jnp.zeros_like(acc_ref)

    def _tile_update(apply_mask):
        def body():
            # GQA heads stacked along rows -> a single MXU call per tile.
            q = q_ref[0, 0].reshape(rows, head_dim)   # (n_rep*tq, d), input dtype
            if scale != 1.0:
                q = q * scale                          # module folds scale into Wq
            k = k_ref[0, 0]                            # (tkv, d)
            v = v_ref[0, 0]                            # (tkv, d)
            # QK^T: contract head_dim of both operands (no K transpose).
            s = lax.dot_general(q, k, (((1,), (1,)), ((), ())),
                                preferred_element_type=jnp.float32)  # (rows,tkv)
            if apply_mask:                             # diagonal-straddling tiles only
                row = (lax.broadcasted_iota(jnp.int32, (rows, tkv), 0) % tq
                       + qt * tq)
                col = lax.broadcasted_iota(jnp.int32, (rows, tkv), 1) + kt * tkv
                s = jnp.where(col > row, _MASK_VALUE, s)
            m_prev = m_ref[...]                                        # (rows, 1)
            m_new = jnp.maximum(m_prev, jnp.max(s, axis=-1, keepdims=True))
            alpha = jnp.exp(m_prev - m_new)
            p = jnp.exp(s - m_new)                                     # (rows, tkv)
            l_ref[...] = alpha * l_ref[...] + jnp.sum(p, axis=-1, keepdims=True)
            acc_ref[...] = alpha * acc_ref[...] + jnp.dot(
                p.astype(v.dtype), v, preferred_element_type=jnp.float32)
            m_ref[...] = m_new
        return body

    if is_causal:
        needed = kt * tkv < (qt + 1) * tq          # tile has >= 1 unmasked score
        straddles = (kt + 1) * tkv > qt * tq + 1   # tile has >= 1 masked score
        pl.when(jnp.logical_and(needed, straddles))(_tile_update(True))
        pl.when(jnp.logical_and(needed, jnp.logical_not(straddles)))(
            _tile_update(False))
    else:
        _tile_update(False)()

    @pl.when(kt == n_kv_tiles - 1)
    def _finalize():
        inv_l = pl.reciprocal(l_ref[...], approx=False)  # exact; once per q tile
        o32 = acc_ref[...] * inv_l                       # (rows, d) f32
        if flat_out:
            # Write the (tq, n_rep*head_dim) lane-dense slab of the flat
            # (B, S, d_model) output directly (heads packed along lanes).
            if n_rep == 1:
                o_ref[0] = o32.astype(o_ref.dtype)
            else:
                o_ref[0] = jnp.concatenate(
                    [o32[r * tq:(r + 1) * tq] for r in range(n_rep)],
                    axis=-1).astype(o_ref.dtype)
        else:
            o_ref[0, 0] = o32.astype(o_ref.dtype).reshape(n_rep, tq, head_dim)


def mha_attention(q, k, v, q_n_heads, kv_n_heads, is_causal=True,
                  softmax_scale=None):
    """q: (B,S,Hq*d), k/v: (B,S,Hkv*d) -> (B,S,Hq*d). GQA flash attention."""
    bsz, seq, d_model = q.shape
    head_dim = d_model // q_n_heads
    n_rep = q_n_heads // kv_n_heads
    if softmax_scale is None:
        softmax_scale = 1.0 / math.sqrt(head_dim)

    # GQA-grouped head split: all n_rep query heads sharing a KV head travel
    # in one block, so each K/V tile is fetched once per group.
    qh = q.reshape(bsz, seq, kv_n_heads, n_rep, head_dim).transpose(0, 2, 3, 1, 4)
    kh = k.reshape(bsz, seq, kv_n_heads, head_dim).transpose(0, 2, 1, 3)
    vh = v.reshape(bsz, seq, kv_n_heads, head_dim).transpose(0, 2, 1, 3)

    # Matched q/kv tiles (tightens the causal skip); keep n_rep*tq rows modest.
    tq = _pick_tile(seq, min(512, max(128, 1024 // n_rep)), 8)
    tkv = tq
    grid = (bsz, kv_n_heads, seq // tq, seq // tkv)

    # Lane-dense flat output layout if legal under the (8,128) constraint.
    flat_out = ((n_rep * head_dim) % 128 == 0) or (n_rep * head_dim == d_model)

    kernel = functools.partial(
        _flash_attn_kernel, scale=softmax_scale, n_rep=n_rep, tq=tq, tkv=tkv,
        head_dim=head_dim, is_causal=is_causal, flat_out=flat_out)

    q_spec = pl.BlockSpec((1, 1, n_rep, tq, head_dim),
                          lambda b, g, i, j: (b, g, 0, i, 0))
    if is_causal:
        def kv_index(b, g, i, j):
            # Clamp causally-skipped tiles to the last needed KV tile: the
            # block index is unchanged there, so the pipeline elides the DMA.
            last_needed = ((i + 1) * tq - 1) // tkv
            return (b, g, jnp.minimum(j, last_needed), 0)
    else:
        def kv_index(b, g, i, j):
            return (b, g, j, 0)
    kv_spec = pl.BlockSpec((1, 1, tkv, head_dim), kv_index)

    if flat_out:
        out_shape = jax.ShapeDtypeStruct((bsz, seq, d_model), q.dtype)
        out_spec = pl.BlockSpec((1, tq, n_rep * head_dim),
                                lambda b, g, i, j: (b, i, g))
    else:
        out_shape = jax.ShapeDtypeStruct(
            (bsz, kv_n_heads, n_rep, seq, head_dim), q.dtype)
        out_spec = pl.BlockSpec((1, 1, n_rep, tq, head_dim),
                                lambda b, g, i, j: (b, g, 0, i, 0))

    rows = n_rep * tq
    itemsize = q.dtype.itemsize
    flops = 4 * bsz * q_n_heads * seq * seq * head_dim
    texp = bsz * q_n_heads * seq * seq
    if is_causal:
        flops //= 2
        texp //= 2
    cost = pl.CostEstimate(
        flops=int(flops), transcendentals=int(texp),
        bytes_accessed=itemsize * (2 * q.size + k.size + v.size))

    out = pl.pallas_call(
        kernel,
        out_shape=out_shape,
        grid_spec=pltpu.PrefetchScalarGridSpec(
            num_scalar_prefetch=0,
            grid=grid,
            in_specs=[q_spec, kv_spec, kv_spec],
            out_specs=out_spec,
            scratch_shapes=[
                pltpu.VMEM((rows, 1), jnp.float32),         # running max
                pltpu.VMEM((rows, 1), jnp.float32),         # running denom
                pltpu.VMEM((rows, head_dim), jnp.float32),  # out accumulator
            ],
        ),
        compiler_params=pltpu.CompilerParams(
            dimension_semantics=("parallel", "parallel", "parallel", "arbitrary"),
            vmem_limit_bytes=_vmem_limit_bytes(),
        ),
        cost_estimate=cost,
    )(qh, kh, vh)

    if flat_out:
        return out
    # Toy head sizes: (B, Hkv, n_rep, S, d) -> (B, S, d_model).
    return out.transpose(0, 3, 1, 2, 4).reshape(bsz, seq, d_model)


# ----------------------------------------------------------------------------
# Module-equivalent wrapper
# ----------------------------------------------------------------------------
class MultiheadAttentionPallas:
    def __init__(self, d_model, q_n_heads, kv_n_heads, key, compute_dtype=None):
        self.d_model = d_model
        self.q_n_heads = q_n_heads
        self.kv_n_heads = kv_n_heads
        self.head_dim = d_model // q_n_heads
        self.kv_dim = self.head_dim * kv_n_heads
        self.compute_dtype = compute_dtype

        ks = jax.random.split(key, 8)

        def lin_init(kw, kb, d_in, d_out):
            bound = 1.0 / math.sqrt(d_in)
            # stored as (d_in, d_out) = transpose of torch's (out, in)
            w = jax.random.uniform(kw, (d_in, d_out), jnp.float32, -bound, bound)
            b = jax.random.uniform(kb, (1, d_out), jnp.float32, -bound, bound)
            return w, b

        # Unscaled f32 copies (used by the pure-JAX reference).
        self.wq, self.bq = lin_init(ks[0], ks[1], d_model, d_model)
        self.wk, self.bk = lin_init(ks[2], ks[3], d_model, self.kv_dim)
        self.wv, self.bv = lin_init(ks[4], ks[5], d_model, self.kv_dim)
        self.wo, self.bo = lin_init(ks[6], ks[7], d_model, d_model)

        def cast(a):
            return a if compute_dtype is None else a.astype(compute_dtype)

        # 1/sqrt(head_dim) folded into Wq/bq: removes a (tq,tkv) VALU multiply
        # per KV tile in the attention kernel.
        scale = 1.0 / math.sqrt(self.head_dim)
        self.wq_c, self.bq_c = cast(self.wq * scale), cast(self.bq * scale)
        self.wk_c, self.bk_c = cast(self.wk), cast(self.bk)
        self.wv_c, self.bv_c = cast(self.wv), cast(self.bv)
        self.wo_c, self.bo_c = cast(self.wo), cast(self.bo)

    def __call__(self, q, kv, is_causal=True):
        bsz, seq, d_model = q.shape
        in_dtype = q.dtype
        if self.compute_dtype is not None:
            q = q.astype(self.compute_dtype)
            kv = kv.astype(self.compute_dtype)
        q2 = q.reshape(bsz * seq, d_model)
        kv2 = kv.reshape(bsz * seq, d_model)

        query = linear(q2, self.wq_c, self.bq_c)          # (B*S, d_model), pre-scaled
        key, value = linear_kv(kv2, self.wk_c, self.bk_c,
                               self.wv_c, self.bv_c)      # 2 x (B*S, kv_dim)

        context = mha_attention(
            query.reshape(bsz, seq, d_model),
            key.reshape(bsz, seq, self.kv_dim),
            value.reshape(bsz, seq, self.kv_dim),
            self.q_n_heads, self.kv_n_heads, is_causal=is_causal,
            softmax_scale=1.0)                            # scale already in Wq

        out = linear(context.reshape(bsz * seq, d_model), self.wo_c, self.bo_c)
        out = out.reshape(bsz, seq, d_model)
        if self.compute_dtype is not None:
            out = out.astype(in_dtype)
        return out, None   # needs_weights=False


# ----------------------------------------------------------------------------
# Pure-JAX reference for verification
# ----------------------------------------------------------------------------
def reference_forward(mod, q, kv, is_causal=True):
    bsz, seq, d_model = q.shape
    hq, hkv, hd = mod.q_n_heads, mod.kv_n_heads, mod.head_dim
    query = q @ mod.wq + mod.bq
    key = kv @ mod.wk + mod.bk
    value = kv @ mod.wv + mod.bv

    qh = query.reshape(bsz, seq, hq, hd).transpose(0, 2, 1, 3)
    kh = key.reshape(bsz, seq, hkv, hd).transpose(0, 2, 1, 3)
    vh = value.reshape(bsz, seq, hkv, hd).transpose(0, 2, 1, 3)
    n_rep = hq // hkv
    kh = jnp.repeat(kh, n_rep, axis=1)
    vh = jnp.repeat(vh, n_rep, axis=1)

    s = jnp.einsum('bhqd,bhkd->bhqk', qh, kh) / math.sqrt(hd)
    if is_causal:
        mask = jnp.triu(jnp.ones((seq, seq), bool), 1)
        s = jnp.where(mask[None, None], jnp.finfo(jnp.float32).min, s)
    p = jax.nn.softmax(s, axis=-1)
    o = jnp.einsum('bhqk,bhkd->bhqd', p, vh)
    ctx = o.transpose(0, 2, 1, 3).reshape(bsz, seq, d_model)
    return ctx @ mod.wo + mod.bo


def _run_case(d_model, q_n_heads, kv_n_heads, batch, seq, seed,
              compute_dtype=None, atol=5e-3, rtol=5e-3):
    root = jax.random.PRNGKey(seed)
    k_params, k_q, k_kv = jax.random.split(root, 3)
    mod = MultiheadAttentionPallas(d_model, q_n_heads, kv_n_heads, k_params,
                                   compute_dtype=compute_dtype)
    q = jax.random.normal(k_q, (batch, seq, d_model), jnp.float32)
    kv = jax.random.normal(k_kv, (batch, seq, d_model), jnp.float32)

    out, _ = mod(q, kv, is_causal=True)
    out = jax.block_until_ready(out)

    ref = reference_forward(mod, q, kv, is_causal=True)
    assert out.shape == (batch, seq, d_model)
    out32 = out.astype(jnp.float32)
    err = float(jnp.max(jnp.abs(out32 - ref)))
    assert jnp.allclose(out32, ref, atol=atol, rtol=rtol), f"max abs err {err}"
    return err


if __name__ == "__main__":
    # Required small case: d_model=32, heads 4/2 (GQA), batch=2, seq=8
    # (n_rep*head_dim=16 -> per-head output layout fallback).
    _run_case(d_model=32, q_n_heads=4, kv_n_heads=2, batch=2, seq=8, seed=0)
    # Tiled GQA case: n_rep*head_dim=128 -> lane-dense flat output, single
    # stacked MXU call per tile, causal tile skip + clamped (DMA-elided) K/V.
    _run_case(d_model=256, q_n_heads=8, kv_n_heads=2, batch=1, seq=1024, seed=1)
    # bf16 MXU-operand path (v6e/v7x peak); f32 accumulation and softmax stats.
    _run_case(d_model=256, q_n_heads=8, kv_n_heads=2, batch=1, seq=1024, seed=1,
              compute_dtype=jnp.bfloat16, atol=1e-1, rtol=5e-2)
    print("KERNEL_OK")
</pallas_src>

<mosaic_0001>
module attributes {stable_mosaic.version = 11 : i64} {
  func.func @_linear_kernel(%arg0: i32, %arg1: i32, %arg2: i32, %arg3: memref<16x32xf32, #tpu.memory_space<vmem>>, %arg4: memref<32x32xf32, #tpu.memory_space<vmem>>, %arg5: memref<1x32xf32, #tpu.memory_space<vmem>>, %arg6: memref<16x32xf32, #tpu.memory_space<vmem>>, %arg7: memref<16x32xf32, #tpu.memory_space<vmem>>) attributes {dimension_semantics = [#tpu.dimension_semantics<parallel>, #tpu.dimension_semantics<parallel>, #tpu.dimension_semantics<arbitrary>], iteration_bounds = array<i64: 1, 1, 1>, scalar_prefetch = 0 : i64, scratch_operands = 1 : i64, tpu.core_type = #tpu.core_type<tc>, window_params = [{transform_indices = @transform_0, window_bounds = array<i64: 16, 32>}, {transform_indices = @transform_1, window_bounds = array<i64: 32, 32>}, {transform_indices = @transform_2, window_bounds = array<i64: 1, 32>}, {transform_indices = @transform_3, window_bounds = array<i64: 16, 32>}]} {
    %c0_i32 = arith.constant 0 : i32
    %0 = arith.cmpi eq, %arg2, %c0_i32 : i32
    %1 = arith.extui %0 : i1 to i32
    %c0_i32_0 = arith.constant 0 : i32
    %2 = arith.cmpi ne, %1, %c0_i32_0 : i32
    scf.if %2 {
      %cst_10 = arith.constant 0.000000e+00 : f32
      %12 = vector.broadcast %cst_10 : f32 to vector<16x32xf32>
      %c0_11 = arith.constant 0 : index
      %c0_12 = arith.constant 0 : index
      %13 = vector.load %arg7[%c0_11, %c0_12] : memref<16x32xf32, #tpu.memory_space<vmem>>, vector<16x32xf32>
      tpu.vector_store %arg7[%c0_11, %c0_12], %12 {strides = array<i32>} : memref<16x32xf32, #tpu.memory_space<vmem>>, vector<16x32xf32>,
    } else {
    }
    %c0 = arith.constant 0 : index
    %c0_1 = arith.constant 0 : index
    %3 = vector.load %arg7[%c0, %c0_1] : memref<16x32xf32, #tpu.memory_space<vmem>>, vector<16x32xf32>
    %c0_2 = arith.constant 0 : index
    %c0_3 = arith.constant 0 : index
    %4 = vector.load %arg3[%c0_2, %c0_3] : memref<16x32xf32, #tpu.memory_space<vmem>>, vector<16x32xf32>
    %c0_4 = arith.constant 0 : index
    %c0_5 = arith.constant 0 : index
    %5 = vector.load %arg4[%c0_4, %c0_5] : memref<32x32xf32, #tpu.memory_space<vmem>>, vector<32x32xf32>
    %cst = arith.constant dense<0.000000e+00> : vector<16x32xf32>
    %6 = tpu.matmul %4, %5, %cst {dimension_numbers = #tpu.dot_dimension_numbers<[1], [0], [0], [1], [0, 0, 1, 1], [], []>} : vector<16x32xf32>, vector<32x32xf32>, vector<16x32xf32> -> vector<16x32xf32>
    %7 = arith.addf %3, %6 : vector<16x32xf32>
    %c0_6 = arith.constant 0 : index
    %c0_7 = arith.constant 0 : index
    %8 = vector.load %arg7[%c0_6, %c0_7] : memref<16x32xf32, #tpu.memory_space<vmem>>, vector<16x32xf32>
    tpu.vector_store %arg7[%c0_6, %c0_7], %7 {strides = array<i32>} : memref<16x32xf32, #tpu.memory_space<vmem>>, vector<16x32xf32>,
    %c0_i32_8 = arith.constant 0 : i32
    %9 = arith.cmpi eq, %arg2, %c0_i32_8 : i32
    %10 = arith.extui %9 : i1 to i32
    %c0_i32_9 = arith.constant 0 : i32
    %11 = arith.cmpi ne, %10, %c0_i32_9 : i32
    scf.if %11 {
      %c0_10 = arith.constant 0 : index
      %c0_11 = arith.constant 0 : index
      %12 = vector.load %arg7[%c0_10, %c0_11] : memref<16x32xf32, #tpu.memory_space<vmem>>, vector<16x32xf32>
      %c0_12 = arith.constant 0 : index
      %c0_13 = arith.constant 0 : index
      %13 = vector.load %arg5[%c0_12, %c0_13] : memref<1x32xf32, #tpu.memory_space<vmem>>, vector<1x32xf32>
      %14 = vector.broadcast %13 : vector<1x32xf32> to vector<16x32xf32>
      %15 = arith.addf %12, %14 : vector<16x32xf32>
      %c0_14 = arith.constant 0 : index
      %c0_15 = arith.constant 0 : index
      %16 = vector.load %arg6[%c0_14, %c0_15] : memref<16x32xf32, #tpu.memory_space<vmem>>, vector<16x32xf32>
      tpu.vector_store %arg6[%c0_14, %c0_15], %15 {strides = array<i32>} : memref<16x32xf32, #tpu.memory_space<vmem>>, vector<16x32xf32>,
    } else {
    }
    return
  }
  func.func @transform_0(%arg0: i32, %arg1: i32, %arg2: i32) -> (i32, i32) {
    %c0_i32 = arith.constant 0 : i32
    return %arg0, %arg2 : i32, i32
  }
  func.func @transform_1(%arg0: i32, %arg1: i32, %arg2: i32) -> (i32, i32) {
    %c0_i32 = arith.constant 0 : i32
    return %arg2, %arg1 : i32, i32
  }
  func.func @transform_2(%arg0: i32, %arg1: i32, %arg2: i32) -> (i32, i32) {
    %c0_i32 = arith.constant 0 : i32
    %c0_i32_0 = arith.constant 0 : i32
    return %c0_i32, %arg1 : i32, i32
  }
  func.func @transform_3(%arg0: i32, %arg1: i32, %arg2: i32) -> (i32, i32) {
    %c0_i32 = arith.constant 0 : i32
    return %arg0, %arg1 : i32, i32
  }
}

</mosaic_0001>

<bundles_post_ra>
// kernel: tpu_custom_call.1
= control target key start
LH: loop header
LB: loop body
LE: loop exit
PB: predicated region body
PF: predicated region fallthrough
CT: control target
= control target key end

     0   :  { %8 = vsyncpa [#allocation4], 0  ;;  %s325_s0 = inlined_call_operand.hbm [shape: f32[16,32], index: 0, kind: input, shape index: {}]   ;;  %s326_s1 = inlined_call_operand.hbm [shape: f32[32,32], index: 1, kind: input, shape index: {}]   ;;  %s327_s2 = inlined_call_operand.vmem [shape: f32[1,32], index: 2, kind: input, shape index: {}]   ;;  %s328_s3 = inlined_call_operand.hbm [shape: f32[16,32], index: 3, kind: output, shape index: {}]  }
   0x1   :  { %9 = vsyncpa [#allocation7], 0 }
   0x2   :  { %10 = vsyncpa [#allocation5], 0  ;;  %s270_s12 = smov [#allocation3]  }
   0x3   :  { %s16_s13 = sshll.u32 %s270_s12, 4  ;;  %s17_s13 = int_to_ptr.vmem [resolvable:$true] %s16_s13 }
   0x4   :  { %s212_s14 = scalar_lea.vmem %s17_s13, 256  ;;  %p217_p1 = scmp.lt.s32.totalorder %s17_s13, %s17_s13 }
   0x5   :  { %p213_p0 = scmp.ne.s32.totalorder %s17_s13, %s212_s14  ;;  %p218_p2 = scmp.lt.s32.totalorder %s212_s14, %s212_s14 }
   0x7   :  { %p219_p3 = por %p218_p2, %p217_p1 }
   0x9   :  { %p220_p4 = pnand %p219_p3, %p213_p0 }
   0xb   :  { %223 = shalt.err (!%p220_p4)
}
   0xc   :  { %s271_s15 = smov 128   ;;  %s272_s16 = smov 8  }
   0xd   :  { %22 = dma.hbm_to_vmem [thread:$0]  %s325_s0, 256, %s17_s13, [#allocation4], %s271_s15, %s271_s15, %s272_s16  }
   0xe   :  { %s273_s19 = smov [#allocation6]  }
   0xf   :  { %s28_s20 = sshll.u32 %s273_s19, 4  ;;  %s29_s20 = int_to_ptr.vmem [resolvable:$true] %s28_s20 }
  0x10   :  { %s232_s21 = scalar_lea.vmem %s29_s20, 512  ;;  %p237_p6 = scmp.lt.s32.totalorder %s29_s20, %s29_s20 }
  0x11   :  { %p233_p5 = scmp.ne.s32.totalorder %s29_s20, %s232_s21  ;;  %p238_p7 = scmp.lt.s32.totalorder %s232_s21, %s232_s21 }
  0x13   :  { %p239_p8 = por %p238_p7, %p237_p6 }
  0x15   :  { %p240_p9 = pnand %p239_p8, %p233_p5 }
  0x17   :  { %243 = shalt.err (!%p240_p9)
}
  0x18   :  { %34 = dma.hbm_to_vmem [thread:$0]  %s326_s1, 512, %s29_s20, [#allocation7], %s271_s15, %s271_s15, %s272_s16  }
  0x19   :  { %264 = dma.done.wait [#allocation4], 256  }
  0x1a   :  { %265 = vsyncadd [#allocation4], 4294967040 }
  0x1b   :  { %266 = dma.done.wait [#allocation7], 512  }
  0x1c   :  { %267 = vsyncadd [#allocation7], 4294966784  ;;  %vm47_vm0 = vcmask 261120   ;;  %v274_v0 = vmov 0.0   ;;  %v57_v1 = vld [vmem:[#allocation6 + $0x18] sm:$0xff]  ;;  %v56_v2 = vld [vmem:[#allocation6 + $0x10] sm:$0xff] }
  0x1d   :  { %49 = vst.msk [vmem:[#allocation2 + $0x8] sm:$0xff] %vm47_vm0, %v274_v0  ;;  %48 = vst.msk [vmem:[#allocation2] sm:$0xff] %vm47_vm0, %v274_v0  ;;  %187 = vmatprep.subr.mxu0 %v57_v1  ;;  %v52_v3 = vld [vmem:[#allocation3] sm:$0xff]  ;;  %v55_v4 = vld [vmem:[#allocation6 + $0x8] sm:$0xff]  ;;  %s275_s24 = smov [#allocation8]  }
  0x1e   :  { %188 = vmatpush3.msra.mxu0 %v57_v1  ;;  %195 = vmatprep.mubr.msk.f32.mxu0 %vm47_vm0, %v52_v3  ;;  %v54_v5 = vld [vmem:[#allocation6] sm:$0xff]  ;;  %v53_v6 = vld [vmem:[#allocation3 + $0x8] sm:$0xff]  ;;  %s165_s25 = sshll.u32 %s275_s24, 4  ;;  %s166_s25 = int_to_ptr.vmem [resolvable:$true] %s165_s25 }
  0x1f   :  { %189 = vmatprep.subr.mxu0 %v56_v2  ;;  %v180_v13 = vld [vmem:[%s327_s2] ss:$0 sm:$0xff]  ;;  %s244_s26 = scalar_lea.vmem %s166_s25, 256  ;;  %p249_p11 = scmp.lt.s32.totalorder %s166_s25, %s166_s25 }
  0x20   :  { %190 = vmatpush3.msra.mxu0 %v56_v2  ;;  %p245_p10 = scmp.ne.s32.totalorder %s166_s25, %s244_s26  ;;  %p250_p12 = scmp.lt.s32.totalorder %s244_s26, %s244_s26 }
  0x21   :  { %191 = vmatprep.subr.mxu0 %v55_v4 }
  0x22   :  { %192 = vmatpush3.msra.mxu0 %v55_v4  ;;  %p251_p13 = por %p250_p12, %p249_p11 }
  0x23   :  { %193 = vmatprep.subr.mxu0 %v54_v5 }
  0x24   :  { %194 = vmatpush3.msra.mxu0 %v54_v5  ;;  %v51_v7 = vld [vmem:[#allocation2 + $0x8] sm:$0xff]  ;;  %v50_v9 = vld [vmem:[#allocation2] sm:$0xff]  ;;  %p252_p0 = pnand %p251_p13, %p245_p10 }
  0x25   :  { %196 = vmatmul.mubr.msk.f32.vlgmr.msra.gmra.mxu0 %vm47_vm0, %v53_v6 }
  0xe5   :  { %v197_v8 = vpop.f32.mrf.mxu0 }
  0xe6   :  { %v141_v10 = vadd.f32 %v197_v8, %v51_v7 }
  0xe7   :  { %v131_v11 = vpop.f32.mrf.mxu0 }
  0xe8   :  { %143 = vst.msk [vmem:[#allocation2 + $0x8] sm:$0xff] %vm47_vm0, %v141_v10  ;;  %v140_v12 = vadd.f32 %v131_v11, %v50_v9 }
  0xea   :  { %142 = vst.msk [vmem:[#allocation2] sm:$0xff] %vm47_vm0, %v140_v12 }
  0xef   :  { %v148_v14 = vld [vmem:[#allocation2 + $0x8] sm:$0xff] }
  0xf0   :  { %v157_v15 = vadd.f32 %v180_v13, %v148_v14 }
  0xf1   :  { %v147_v16 = vld [vmem:[#allocation2] sm:$0xff] }
  0xf2   :  { %v156_v17 = vadd.f32 %v180_v13, %v147_v16  ;;  %159 = vst.msk [vmem:[#allocation8 + $0x8] sm:$0xff] %vm47_vm0, %v157_v15 }
  0xf4   :  { %158 = vst.msk [vmem:[#allocation8] sm:$0xff] %vm47_vm0, %v156_v17 }
  0xf5   :  { %255 = shalt.err (!%p252_p0)
}
  0xf6   :  { %171 = dma.vmem_to_hbm [thread:$0]  %s166_s25, 256, %s328_s3, [#allocation5], %s271_s15, %s271_s15, %s272_s16  }
  0xf7   :  { %268 = dma.done.wait [#allocation5], 256  }
  0xf8   :  { %269 = vsyncadd [#allocation5], 4294967040 }
  0xf9   :  { %175 = vsyncpa [#allocation4], 1 }
  0xfa   :  { %176 = vsyncpa [#allocation7], 1 }
  0xfb   :  { %177 = vsyncpa [#allocation5], 1 }

</bundles_post_ra>
